<compile_context>
chip_gen: v7x
topology: tpu7x:2x2x1
jax: 0.10.0
libtpu: 0.0.40
codegen_flags: <defaults>
</compile_context>

<pallas_src>
import jax
import jax.numpy as jnp
from jax.experimental import pallas as pl
from jax.experimental.pallas import tpu as pltpu


def _round_up(x, m):
    return ((x + m - 1) // m) * m


def pathos_kernel(x_ref, w1_ref, b1_ref, w23_ref, b23_ref, o_ref):
    # x tile: (tile_m, in_size); weights/biases are full-array blocks resident in VMEM.
    x = x_ref[...]

    # Linear(in, 20) -> ReLU   (MXU accumulates in f32; bias/ReLU in f32)
    h1 = jnp.dot(x, w1_ref[...], preferred_element_type=jnp.float32) + b1_ref[...]
    h1 = jnp.maximum(h1, 0.0)

    # Folded Linear(20,10) @ Linear(10,3)  ->  single Linear(20, 3)
    logits = (
        jnp.dot(h1.astype(w23_ref.dtype), w23_ref[...],
                preferred_element_type=jnp.float32)
        + b23_ref[...]
    )

    # Sigmoid epilogue. exp(-logits) may hit +inf for very negative logits;
    # 1/(1+inf) = 0 is the correct limit, and OOB rows of a partial last block
    # are masked on store anyway.
    o_ref[...] = 1.0 / (1.0 + jnp.exp(-logits))


def pathos_unit_forward(x, params, *, max_tile_m=8192, weight_dtype=None):
    """Forward pass of PathosUnit. x: [batch, input_size] -> [batch, output_size]."""
    w1, b1, w2, b2, w3, b3 = params
    batch, in_size = x.shape
    hid = w1.shape[1]            # 20
    out_size = w3.shape[1]       # 3

    # --- algebraic fold of the last two Linears (exact, done in f32) ---
    w2f, w3f = w2.astype(jnp.float32), w3.astype(jnp.float32)
    w23 = w2f @ w3f                                               # (20, out_size)
    b23 = b2.astype(jnp.float32) @ w3f + b3.astype(jnp.float32)   # (1, out_size)

    # Weights follow x's storage dtype by default (tiny + VMEM-resident, so the
    # cast costs nothing); x itself is never re-cast in the wrapper (no extra
    # HBM pass). Biases / accumulation / epilogue stay f32.
    wdt = jnp.dtype(weight_dtype) if weight_dtype is not None else x.dtype
    w1c = w1.astype(wdt)
    w23c = w23.astype(wdt)
    b1f = b1.astype(jnp.float32)
    b23f = b23.astype(jnp.float32)

    # --- batch tiling (rows multiple of 8 sublanes; no padding of x) ---
    max_tile_m = max(8, (max_tile_m // 8) * 8)
    if batch > max_tile_m:
        tile_m = max_tile_m
    elif batch >= 2048:
        # Big enough to split: guarantee >=2 grid steps so the "parallel" batch
        # axis can shard across v7x's two TensorCores.
        tile_m = _round_up(pl.cdiv(batch, 2), 8)
    else:
        tile_m = _round_up(batch, 8)
    grid = (pl.cdiv(batch, tile_m),)

    # --- VMEM budget from the lane-padded layout (minor dims pad to 128 lanes),
    #     double-buffered x and output tiles, plus headroom for weights/epilogue.
    itemsize = jnp.dtype(x.dtype).itemsize
    x_buf_bytes = tile_m * _round_up(in_size, 128) * itemsize
    o_buf_bytes = tile_m * _round_up(out_size, 128) * 4
    vmem_limit = int(2 * (x_buf_bytes + o_buf_bytes)) + (8 << 20)
    vmem_limit = min(max(vmem_limit, 16 << 20), 64 << 20)

    cost = pl.CostEstimate(
        flops=2 * batch * (in_size * hid + hid * out_size),
        transcendentals=batch * out_size,
        bytes_accessed=(batch * (in_size * itemsize + out_size * 4)
                        + (in_size * hid + hid * out_size) * jnp.dtype(wdt).itemsize
                        + (hid + out_size) * 4),
    )

    return pl.pallas_call(
        pathos_kernel,
        out_shape=jax.ShapeDtypeStruct((batch, out_size), jnp.float32),
        grid=grid,
        in_specs=[
            pl.BlockSpec((tile_m, in_size), lambda i: (i, 0)),   # x: streamed per tile
            pl.BlockSpec((in_size, hid),    lambda i: (0, 0)),   # W1: resident
            pl.BlockSpec((1, hid),          lambda i: (0, 0)),   # b1
            pl.BlockSpec((hid, out_size),   lambda i: (0, 0)),   # W23 (folded)
            pl.BlockSpec((1, out_size),     lambda i: (0, 0)),   # b23 (folded)
        ],
        out_specs=pl.BlockSpec((tile_m, out_size), lambda i: (i, 0)),
        compiler_params=pltpu.CompilerParams(
            dimension_semantics=("parallel",),   # both TCs on v7x (needs >=2 steps)
            vmem_limit_bytes=vmem_limit),
        cost_estimate=cost,
    )(x, w1c, b1f, w23c, b23f)


def init_params(key, input_size, output_size=3):
    """Deterministic synthetic parameters (shapes match PathosUnit.__init__)."""
    ks = jax.random.split(key, 6)
    # Stored as [in, out]; biases kept 2D (1, out) for TPU friendliness.
    w1 = jax.random.normal(ks[0], (input_size, 20), jnp.float32) * 0.1
    b1 = jax.random.normal(ks[1], (1, 20), jnp.float32) * 0.1
    w2 = jax.random.normal(ks[2], (20, 10), jnp.float32) * 0.1
    b2 = jax.random.normal(ks[3], (1, 10), jnp.float32) * 0.1
    w3 = jax.random.normal(ks[4], (10, output_size), jnp.float32) * 0.1
    b3 = jax.random.normal(ks[5], (1, output_size), jnp.float32) * 0.1
    return (w1, b1, w2, b2, w3, b3)


def reference_forward(x, params):
    """Pure-JAX reference, unfolded (verifies the W2@W3 fold as well)."""
    w1, b1, w2, b2, w3, b3 = params
    h1 = jnp.maximum(x @ w1 + b1, 0.0)
    feats = h1 @ w2 + b2
    return jax.nn.sigmoid(feats @ w3 + b3)


if __name__ == "__main__":
    key = jax.random.PRNGKey(0)
    k_x, k_p, k_x2 = jax.random.split(key, 3)

    input_size = 32
    output_size = 3
    params = init_params(k_p, input_size, output_size)

    # Small shape consistent with the module (batch=8) — single tile.
    x_small = jax.random.normal(k_x, (8, input_size), jnp.float32)
    out_small = jax.block_until_ready(pathos_unit_forward(x_small, params))
    ref_small = reference_forward(x_small, params)
    assert out_small.shape == (8, output_size)
    assert jnp.allclose(out_small, ref_small, atol=1e-5, rtol=1e-5)

    # Larger ragged batch: multi-step grid with a partial last block (no jnp.pad,
    # no output slice), small explicit tile to force >2 steps.
    x_big = jax.random.normal(k_x2, (5000, input_size), jnp.float32)
    ref_big = reference_forward(x_big, params)
    out_tiled = jax.block_until_ready(
        pathos_unit_forward(x_big, params, max_tile_m=2048))
    assert out_tiled.shape == (5000, output_size)
    assert jnp.allclose(out_tiled, ref_big, atol=1e-5, rtol=1e-5)

    # Default large-tile path: batch splits into 2 grid steps (v7x megacore).
    out_default = jax.block_until_ready(pathos_unit_forward(x_big, params))
    assert jnp.allclose(out_default, ref_big, atol=1e-5, rtol=1e-5)

    # bf16-at-rest input: kernel consumes it directly (no wrapper cast pass);
    # weights follow x's dtype, accumulation/epilogue stay f32.
    x_bf16 = x_big.astype(jnp.bfloat16)
    out_bf16 = jax.block_until_ready(pathos_unit_forward(x_bf16, params))
    ref_bf16 = reference_forward(x_bf16.astype(jnp.float32), params)
    assert jnp.allclose(out_bf16, ref_bf16, atol=2e-2, rtol=2e-2)

    print("KERNEL_OK")
</pallas_src>

<mosaic_0001>
module attributes {stable_mosaic.version = 11 : i64} {
  func.func @pathos_kernel(%arg0: i32, %arg1: memref<8x32xf32, #tpu.memory_space<vmem>>, %arg2: memref<32x20xf32, #tpu.memory_space<vmem>>, %arg3: memref<1x20xf32, #tpu.memory_space<vmem>>, %arg4: memref<20x3xf32, #tpu.memory_space<vmem>>, %arg5: memref<1x3xf32, #tpu.memory_space<vmem>>, %arg6: memref<8x3xf32, #tpu.memory_space<vmem>>) attributes {dimension_semantics = [#tpu.dimension_semantics<parallel>], iteration_bounds = array<i64: 1>, scalar_prefetch = 0 : i64, scratch_operands = 0 : i64, tpu.core_type = #tpu.core_type<tc>, window_params = [{transform_indices = @transform_0, window_bounds = array<i64: 8, 32>}, {pipeline_mode = #tpu.pipeline_mode<synchronous>, transform_indices = @transform_1, window_bounds = array<i64: 32, 20>}, {pipeline_mode = #tpu.pipeline_mode<synchronous>, transform_indices = @transform_2, window_bounds = array<i64: 1, 20>}, {pipeline_mode = #tpu.pipeline_mode<synchronous>, transform_indices = @transform_3, window_bounds = array<i64: 20, 3>}, {pipeline_mode = #tpu.pipeline_mode<synchronous>, transform_indices = @transform_4, window_bounds = array<i64: 1, 3>}, {transform_indices = @transform_5, window_bounds = array<i64: 8, 3>}]} {
    %c0 = arith.constant 0 : index
    %c0_0 = arith.constant 0 : index
    %0 = vector.load %arg1[%c0, %c0_0] : memref<8x32xf32, #tpu.memory_space<vmem>>, vector<8x32xf32>
    %c0_1 = arith.constant 0 : index
    %c0_2 = arith.constant 0 : index
    %1 = vector.load %arg2[%c0_1, %c0_2] : memref<32x20xf32, #tpu.memory_space<vmem>>, vector<32x20xf32>
    %cst = arith.constant dense<0.000000e+00> : vector<8x20xf32>
    %2 = tpu.matmul %0, %1, %cst {dimension_numbers = #tpu.dot_dimension_numbers<[1], [0], [0], [1], [0, 0, 1, 1], [], []>} : vector<8x32xf32>, vector<32x20xf32>, vector<8x20xf32> -> vector<8x20xf32>
    %c0_3 = arith.constant 0 : index
    %c0_4 = arith.constant 0 : index
    %3 = vector.load %arg3[%c0_3, %c0_4] : memref<1x20xf32, #tpu.memory_space<vmem>>, vector<1x20xf32>
    %4 = vector.broadcast %3 : vector<1x20xf32> to vector<8x20xf32>
    %5 = arith.addf %2, %4 : vector<8x20xf32>
    %cst_5 = arith.constant 0.000000e+00 : f32
    %6 = vector.broadcast %cst_5 : f32 to vector<8x20xf32>
    %7 = arith.maximumf %5, %6 : vector<8x20xf32>
    %c0_6 = arith.constant 0 : index
    %c0_7 = arith.constant 0 : index
    %8 = vector.load %arg4[%c0_6, %c0_7] : memref<20x3xf32, #tpu.memory_space<vmem>>, vector<20x3xf32>
    %cst_8 = arith.constant dense<0.000000e+00> : vector<8x3xf32>
    %9 = tpu.matmul %7, %8, %cst_8 {dimension_numbers = #tpu.dot_dimension_numbers<[1], [0], [0], [1], [0, 0, 1, 1], [], []>} : vector<8x20xf32>, vector<20x3xf32>, vector<8x3xf32> -> vector<8x3xf32>
    %c0_9 = arith.constant 0 : index
    %c0_10 = arith.constant 0 : index
    %10 = vector.load %arg5[%c0_9, %c0_10] : memref<1x3xf32, #tpu.memory_space<vmem>>, vector<1x3xf32>
    %11 = vector.broadcast %10 : vector<1x3xf32> to vector<8x3xf32>
    %12 = arith.addf %9, %11 : vector<8x3xf32>
    %cst_11 = arith.constant 0.000000e+00 : f32
    %13 = vector.broadcast %cst_11 : f32 to vector<8x3xf32>
    %14 = arith.subf %13, %12 : vector<8x3xf32>
    %15 = math.exp %14 : vector<8x3xf32>
    %cst_12 = arith.constant 1.000000e+00 : f32
    %16 = vector.broadcast %cst_12 : f32 to vector<8x3xf32>
    %17 = arith.addf %16, %15 : vector<8x3xf32>
    %cst_13 = arith.constant 1.000000e+00 : f32
    %18 = vector.broadcast %cst_13 : f32 to vector<8x3xf32>
    %19 = arith.divf %18, %17 : vector<8x3xf32>
    %c0_14 = arith.constant 0 : index
    %c0_15 = arith.constant 0 : index
    %20 = vector.load %arg6[%c0_14, %c0_15] : memref<8x3xf32, #tpu.memory_space<vmem>>, vector<8x3xf32>
    tpu.vector_store %arg6[%c0_14, %c0_15], %19 {strides = array<i32>} : memref<8x3xf32, #tpu.memory_space<vmem>>, vector<8x3xf32>,
    return
  }
  func.func @transform_0(%arg0: i32) -> (i32, i32) {
    %c0_i32 = arith.constant 0 : i32
    %c0_i32_0 = arith.constant 0 : i32
    return %arg0, %c0_i32 : i32, i32
  }
  func.func @transform_1(%arg0: i32) -> (i32, i32) {
    %c0_i32 = arith.constant 0 : i32
    %c0_i32_0 = arith.constant 0 : i32
    %c0_i32_1 = arith.constant 0 : i32
    return %c0_i32, %c0_i32_0 : i32, i32
  }
  func.func @transform_2(%arg0: i32) -> (i32, i32) {
    %c0_i32 = arith.constant 0 : i32
    %c0_i32_0 = arith.constant 0 : i32
    %c0_i32_1 = arith.constant 0 : i32
    return %c0_i32, %c0_i32_0 : i32, i32
  }
  func.func @transform_3(%arg0: i32) -> (i32, i32) {
    %c0_i32 = arith.constant 0 : i32
    %c0_i32_0 = arith.constant 0 : i32
    %c0_i32_1 = arith.constant 0 : i32
    return %c0_i32, %c0_i32_0 : i32, i32
  }
  func.func @transform_4(%arg0: i32) -> (i32, i32) {
    %c0_i32 = arith.constant 0 : i32
    %c0_i32_0 = arith.constant 0 : i32
    %c0_i32_1 = arith.constant 0 : i32
    return %c0_i32, %c0_i32_0 : i32, i32
  }
  func.func @transform_5(%arg0: i32) -> (i32, i32) {
    %c0_i32 = arith.constant 0 : i32
    %c0_i32_0 = arith.constant 0 : i32
    return %arg0, %c0_i32 : i32, i32
  }
}

</mosaic_0001>

<bundles_post_ra>
// kernel: tpu_custom_call.1
= control target key start
LH: loop header
LB: loop body
LE: loop exit
PB: predicated region body
PF: predicated region fallthrough
CT: control target
= control target key end

     0   :  { %v257_v0 = vmov 0.0|0.0   ;;  %vm258_vm0 = vmmov 0   ;;  %v259_v4 = vmov 0.0   ;;  %vm32_vm1 = vcmask 261120   ;;  %s323_s1 = inlined_call_operand.vmem [shape: f32[32,20], index: 1, kind: input, shape index: {}]   ;;  %s324_s0 = inlined_call_operand.vmem [shape: f32[8,32], index: 0, kind: input, shape index: {}]   ;;  %s325_s3 = inlined_call_operand.vmem [shape: f32[20,3], index: 3, kind: input, shape index: {}]   ;;  %s326_s2 = inlined_call_operand.vmem [shape: f32[1,20], index: 2, kind: input, shape index: {}]   ;;  %s327_s4 = inlined_call_operand.vmem [shape: f32[1,3], index: 4, kind: input, shape index: {}]   ;;  %s328_s5 = inlined_call_operand.vmem [shape: f32[8,3], index: 5, kind: output, shape index: {}]  }
   0x1   :  { %241 = vmatprep.subr.bf16.mxu0 %v257_v0  ;;  %v21_v1 = vld [vmem:[%s323_s1] sm:$0xff]  ;;  %v22_v2 = vld [vmem:[%s323_s1 + $0x8] sm:$0xff]  ;;  %v23_v3 = vld [vmem:[%s323_s1 + $0x10] sm:$0xff]  ;;  %229 = vmatprep.mubr.msk.f32.mxu0 %vm258_vm0, %v259_v4  ;;  %vm121_vm2 = vcmask 1043456   ;;  %vm117_vm3 = vcmask 162816   ;;  %vm201_vm4 = vcmask 23552  }
   0x2   :  { %v242_v5 = vpack.c.bf16 %v22_v2, %v21_v1  ;;  %v24_v6 = vld [vmem:[%s323_s1 + $0x18] sm:$0xff]  ;;  %247 = vmatprep.subr.bf16.mxu1 %v257_v0  ;;  %238 = vmatprep.mubr.msk.f32.mxu1 %vm258_vm0, %v259_v4  ;;  %v20_v8 = vld [vmem:[%s324_s0] sm:$0xff]  ;;  %v108_v10 = vld [vmem:[%s325_s3 + $0x8] sm:$0xff] }
   0x3   :  { %v245_v7 = vpack.c.bf16 %v24_v6, %v23_v3  ;;  %v107_v9 = vld [vmem:[%s325_s3] sm:$0xff]  ;;  %v109_v12 = vld [vmem:[%s325_s3 + $0x10] sm:$0xf] }
   0x4   :  { %243 = vmatpush3.bf16.msra.mxu0 %v242_v5  ;;  %v248_v11 = vpack.c.bf16 %v108_v10, %v107_v9  ;;  %v207_v13 = vld [vmem:[%s326_s2] ss:$0 sm:$0xff] }
   0x5   :  { %244 = vmatprep.subr.bf16.mxu0 %v257_v0  ;;  %v209_v18 = vld [vmem:[%s327_s4] ss:$0 sm:$0xff] }
   0x6   :  { %249 = vmatpush3.bf16.msra.mxu1 %v248_v11 }
   0x7   :  { %236 = vmatprep.subr.mxu1 %v259_v4 }
   0x8   :  { %246 = vmatpush3.bf16.msra.mxu0 %v245_v7 }
   0xa   :  { %237 = vmatpush3.msk.msra.mxu1 %vm121_vm2, %v109_v12 }
   0xb   :  { %230 = vmatmul.mubr.msk.f32.vlgmr.msra.gmra.mrb[0].mxu0 %vm32_vm1, %v20_v8 }
  0xde   :  { %v102_v14 = vpop.f32.mrb[0].mxu0 }
  0xdf   :  { %v103_v15 = vadd.f32 %v207_v13, %v102_v14  ;;  %v231_v16 = vpop.f32.mrb[1].mxu0 }
  0xe1   :  { %v106_v17 = vmax.f32 %v103_v15, 0.0 }
  0xe3   :  { %239 = vmatmul.mubr.msk.f32.vlgmr.msra.gmra.mrb[0].mxu1 %vm117_vm3, %v106_v17 }
 0x1b6   :  { %v191_v19 = vpop.f32.mrb[0].mxu1 }
 0x1b7   :  { %v192_v20 = vadd.f32 %v209_v18, %v191_v19  ;;  %v240_v21 = vpop.f32.mrb[1].mxu1 }
 0x1b9   :  { %v195_v22 = vsub.f32 0.0, %v192_v20 }
 0x1bb   :  { %v196_v23 = vmul.f32 1.442695, %v195_v22 }
 0x1bd   :  { %253 = vpow2.f32 %v196_v23 }
 0x1c7   :  { %v254_v24 = vpop.eup %253 }
 0x1c8   :  { %v198_v25 = vadd.f32 1.0, %v254_v24 }
 0x1ca   :  { %255 = vrcp.f32 %v198_v25 }
 0x1d4   :  { %v256_v26 = vpop.eup %255 }
 0x1d5   :  { %202 = vst.msk [vmem:[%s328_s5] sm:$0xff] %vm201_vm4, %v256_v26 }

</bundles_post_ra>
